<compile_context>
chip_gen: v7x
topology: tpu7x:2x2x1
jax: 0.10.0
libtpu: 0.0.40
codegen_flags: <defaults>
</compile_context>

<pallas_src>
import functools
import math

import jax
import jax.numpy as jnp
from jax.experimental import pallas as pl
from jax.experimental.pallas import tpu as pltpu


# ----------------------------------------------------------------------------
# Kernel
# ----------------------------------------------------------------------------
def _patch_embed_kernel(x_ref, w_ref, b_ref, pos_ref, o_ref, *, group):
    """One grid step handles `group` whole examples worth of patch rows.

    x_ref:   (group*num_patches, patch_len)  bf16  (grid-varying)
    w_ref:   (patch_len, d_model)            bf16  (constant index)
    b_ref:   (1, d_model)                    f32   (constant; exact image of bf16 bias)
    pos_ref: (num_patches, d_model)          f32   (constant index)
    o_ref:   (group*num_patches, d_model)    f32   (grid-varying)
    """
    acc = jnp.dot(x_ref[...], w_ref[...], preferred_element_type=jnp.float32)
    acc = acc + b_ref[...]                              # bias in the f32 accumulator
    y = acc.astype(jnp.bfloat16).astype(jnp.float32)    # nn.Linear(bf16) output dtype
    # Block starts are example-aligned, so row r of the block is patch r % num_patches:
    # broadcast the small (num_patches, d_model) pos tile over the group in-kernel.
    pos = jnp.tile(pos_ref[...], (group, 1))
    o_ref[...] = y + pos                                # bf16 value + f32 pos -> f32


# ----------------------------------------------------------------------------
# Static tile sizing (shapes only; runs once per shape at trace time)
# ----------------------------------------------------------------------------
def _round_up(x, m):
    return ((x + m - 1) // m) * m


def _block_bytes(rows, cols, itemsize, sublane):
    """VMEM bytes of a (rows, cols) block after Mosaic lane/sublane padding."""
    return _round_up(rows, sublane) * _round_up(cols, 128) * itemsize


def _vmem_estimate(group, num_patches, patch_len, d_model):
    rows = group * num_patches
    x_blk = _block_bytes(rows, patch_len, 2, 16)      # bf16, grid-varying
    o_blk = _block_bytes(rows, d_model, 4, 8)         # f32,  grid-varying
    w_blk = _block_bytes(patch_len, d_model, 2, 16)   # bf16, constant index
    b_blk = _block_bytes(1, d_model, 4, 8)            # f32,  constant index
    p_blk = _block_bytes(num_patches, d_model, 4, 8)  # f32,  constant index
    # Grid-varying blocks are double-buffered by the pipeline; constants are not.
    return 2 * (x_blk + o_blk) + (w_blk + b_blk + p_blk)


def _vmem_capacity_bytes():
    try:
        return int(pltpu.get_tpu_info().vmem_capacity_bytes)
    except Exception:
        return 64 << 20       # conservative fallback: v7x per-TensorCore VMEM


def _choose_group(bc, num_patches, patch_len, d_model, budget_bytes):
    """Examples per grid step.  Need NOT divide bc (ragged last block is masked)."""
    # Smallest group keeping the row block a multiple of 16 (bf16 sublane tile).
    m0 = 16 // math.gcd(num_patches, 16)
    if m0 >= bc:
        return bc             # one block == full row extent (always a legal BlockSpec)

    est = lambda g: _vmem_estimate(g, num_patches, patch_len, d_model)
    out_bytes = lambda g: g * num_patches * _round_up(d_model, 128) * 4
    steps = lambda g: -(-bc // g)

    fitting = [g for g in range(m0, (bc // m0) * m0 + 1, m0)
               if est(g) <= budget_bytes]
    if not fitting:
        return m0             # smallest aligned block; vmem_limit sized from its estimate

    def score(g):
        s = steps(g)
        return (
            out_bytes(g) >= (1 << 20),   # >=1 MiB f32 out/step amortizes ~0.35us overhead
            s >= 2,                      # pipeline overlap; both v7x cores get work
            s >= 4 and s % 2 == 0,       # balanced split across v7x's 2 TensorCores
            out_bytes(g),                # otherwise: biggest tile wins (HBM roofline)
        )

    return max(fitting, key=score)


# ----------------------------------------------------------------------------
# Wrapper
# ----------------------------------------------------------------------------
@functools.partial(jax.jit, static_argnames=("patch_len", "stride"))
def temporal_patch_embedding(x, w_t, bias, pos_embedding, *, patch_len, stride):
    """Forward pass of TemporalPatchEmbedding (eval mode).

    x:             (B, C, T)                    any float dtype
    w_t:           (patch_len, d_model)         bf16 (transposed nn.Linear weight)
    bias:          (d_model,)                   bf16
    pos_embedding: (max_num_patches, d_model)   f32
    Returns (out, n_vars) with out: (B*C, num_patches, d_model) f32.
    """
    B, C, T = x.shape
    d_model = w_t.shape[1]
    n_vars = C
    bc = B * C

    # --- XLA glue: cast + ReplicationPad1d((0, stride)) + unfold -------------
    x = x.astype(jnp.bfloat16)
    pad = jnp.repeat(x[..., -1:], stride, axis=-1)            # replicate last value
    x_padded = jnp.concatenate([x, pad], axis=-1)             # (B, C, T + stride)
    Tp = T + stride
    num_patches = (Tp - patch_len) // stride + 1

    if patch_len % stride == 0:
        # unfold as patch_len//stride contiguous slices + one concat
        # (bitwise identical to torch.Tensor.unfold, no gather HLO).
        r = patch_len // stride
        pieces = [
            x_padded[..., j * stride: j * stride + num_patches * stride]
            .reshape(B, C, num_patches, stride)
            for j in range(r)
        ]
        patches = jnp.concatenate(pieces, axis=-1)            # (B, C, np, patch_len)
    else:
        idx = (stride * jnp.arange(num_patches)[:, None]
               + jnp.arange(patch_len)[None, :])
        patches = x_padded[..., idx]                          # gather fallback
    patches2d = patches.reshape(bc * num_patches, patch_len)  # contiguous (free)

    # --- generation-aware tile sizing ----------------------------------------
    vmem_cap = _vmem_capacity_bytes()
    budget = int(0.4 * vmem_cap)          # ~25 MiB on v7x, ~51 MiB on v5e/v6e
    group = _choose_group(bc, num_patches, patch_len, d_model, budget)
    rows = group * num_patches
    grid = (pl.cdiv(bc, group),)          # ragged last block handled by Pallas masking
    est = _vmem_estimate(group, num_patches, patch_len, d_model)

    vmem_limit = min(max(2 * est, 32 << 20), int(0.7 * vmem_cap))
    vmem_limit = int(max(vmem_limit, min(est + (4 << 20), int(0.95 * vmem_cap))))

    pos_np = pos_embedding[:num_patches].astype(jnp.float32)  # (np, d_model), no tiling
    bias_f32 = bias.astype(jnp.float32).reshape(1, d_model)

    kernel = functools.partial(_patch_embed_kernel, group=group)

    # NOTE: keep d_model a multiple of 128 (pad params upstream if not) so the
    # dominant f32 output store stays an unmasked lane-dense vst.
    out2d = pl.pallas_call(
        kernel,
        out_shape=jax.ShapeDtypeStruct((bc * num_patches, d_model), jnp.float32),
        grid_spec=pltpu.PrefetchScalarGridSpec(
            num_scalar_prefetch=0,
            grid=grid,
            in_specs=[
                pl.BlockSpec((rows, patch_len), lambda i: (i, 0)),
                pl.BlockSpec((patch_len, d_model), lambda i: (0, 0)),
                pl.BlockSpec((1, d_model), lambda i: (0, 0)),
                pl.BlockSpec((num_patches, d_model), lambda i: (0, 0)),
            ],
            out_specs=pl.BlockSpec((rows, d_model), lambda i: (i, 0)),
        ),
        compiler_params=pltpu.CompilerParams(
            dimension_semantics=("parallel",),
            vmem_limit_bytes=vmem_limit,
        ),
    )(patches2d, w_t, bias_f32, pos_np)

    out = out2d.reshape(bc, num_patches, d_model)             # contiguous (free)
    # TODO(synk): nn.Dropout(0.1) is identity in eval mode; training-mode random
    # masking is not implemented here.
    return out, n_vars


# ----------------------------------------------------------------------------
# Pure-JAX reference (independent gather-based unfold) for correctness
# ----------------------------------------------------------------------------
def _reference(x, w_t, bias, pos_embedding, *, patch_len, stride):
    B, C, T = x.shape
    x = x.astype(jnp.bfloat16)
    pad = jnp.repeat(x[..., -1:], stride, axis=-1)
    xp = jnp.concatenate([x, pad], axis=-1)
    num_patches = (T + stride - patch_len) // stride + 1
    idx = stride * jnp.arange(num_patches)[:, None] + jnp.arange(patch_len)[None, :]
    p = xp[..., idx].reshape(B * C, num_patches, patch_len)
    y = (jnp.einsum("bnk,kd->bnd", p, w_t,
                    preferred_element_type=jnp.float32)
         + bias.astype(jnp.float32)).astype(jnp.bfloat16)
    return y.astype(jnp.float32) + pos_embedding[:num_patches, :].astype(jnp.float32)


if __name__ == "__main__":
    # Small shapes consistent with the module; d_model=128 keeps the f32 output
    # store lane-dense (the dominant byte stream of this HBM-bound kernel).
    B, C, T = 2, 4, 16
    patch_len, stride, d_model = 8, 4, 128
    max_num_patches = 5000

    key = jax.random.PRNGKey(0)
    kx, kw, kb, kp = jax.random.split(key, 4)

    x = jax.random.normal(kx, (B, C, T), dtype=jnp.float32)

    # Parameter init matching __init__ shapes:
    #   nn.Linear(patch_len, d_model).to(bf16): weight (d_model, patch_len), bias (d_model,)
    #   pos_embedding: (max_num_patches, d_model) f32
    bound = 1.0 / (patch_len ** 0.5)
    w = jax.random.uniform(kw, (d_model, patch_len), jnp.float32,
                           minval=-bound, maxval=bound).astype(jnp.bfloat16)
    b = jax.random.uniform(kb, (d_model,), jnp.float32,
                           minval=-bound, maxval=bound).astype(jnp.bfloat16)
    pos = jax.random.normal(kp, (max_num_patches, d_model), dtype=jnp.float32)

    w_t = w.T  # (patch_len, d_model)

    out, n_vars = temporal_patch_embedding(
        x, w_t, b, pos, patch_len=patch_len, stride=stride)
    out = jax.block_until_ready(out)

    ref = _reference(x, w_t, b, pos, patch_len=patch_len, stride=stride)
    num_patches = (T + stride - patch_len) // stride + 1
    assert out.shape == ref.shape == (B * C, num_patches, d_model)
    assert out.dtype == jnp.float32
    assert n_vars == C
    assert jnp.allclose(out, ref, atol=1e-2, rtol=1e-2)

    print("KERNEL_OK")
</pallas_src>

<mosaic_0001>
module attributes {stable_mosaic.version = 11 : i64} {
  func.func @_patch_embed_kernel(%arg0: i32, %arg1: memref<16x8xbf16, #tpu.memory_space<vmem>>, %arg2: memref<8x128xbf16, #tpu.memory_space<vmem>>, %arg3: memref<1x128xf32, #tpu.memory_space<vmem>>, %arg4: memref<4x128xf32, #tpu.memory_space<vmem>>, %arg5: memref<16x128xf32, #tpu.memory_space<vmem>>) attributes {dimension_semantics = [#tpu.dimension_semantics<parallel>], iteration_bounds = array<i64: 2>, scalar_prefetch = 0 : i64, scratch_operands = 0 : i64, tpu.core_type = #tpu.core_type<tc>, window_params = [{transform_indices = @transform_0, window_bounds = array<i64: 16, 8>}, {pipeline_mode = #tpu.pipeline_mode<synchronous>, transform_indices = @transform_1, window_bounds = array<i64: 8, 128>}, {pipeline_mode = #tpu.pipeline_mode<synchronous>, transform_indices = @transform_2, window_bounds = array<i64: 1, 128>}, {pipeline_mode = #tpu.pipeline_mode<synchronous>, transform_indices = @transform_3, window_bounds = array<i64: 4, 128>}, {transform_indices = @transform_4, window_bounds = array<i64: 16, 128>}]} {
    %c0 = arith.constant 0 : index
    %c0_0 = arith.constant 0 : index
    %0 = vector.load %arg1[%c0, %c0_0] : memref<16x8xbf16, #tpu.memory_space<vmem>>, vector<16x8xbf16>
    %c0_1 = arith.constant 0 : index
    %c0_2 = arith.constant 0 : index
    %1 = vector.load %arg2[%c0_1, %c0_2] : memref<8x128xbf16, #tpu.memory_space<vmem>>, vector<8x128xbf16>
    %cst = arith.constant dense<0.000000e+00> : vector<16x128xf32>
    %2 = tpu.matmul %0, %1, %cst {dimension_numbers = #tpu.dot_dimension_numbers<[1], [0], [0], [1], [0, 0, 1, 1], [], []>} : vector<16x8xbf16>, vector<8x128xbf16>, vector<16x128xf32> -> vector<16x128xf32>
    %c0_3 = arith.constant 0 : index
    %c0_4 = arith.constant 0 : index
    %3 = vector.load %arg3[%c0_3, %c0_4] : memref<1x128xf32, #tpu.memory_space<vmem>>, vector<1x128xf32>
    %4 = vector.broadcast %3 : vector<1x128xf32> to vector<16x128xf32>
    %5 = arith.addf %2, %4 : vector<16x128xf32>
    %6 = arith.truncf %5 : vector<16x128xf32> to vector<16x128xbf16>
    %7 = arith.extf %6 : vector<16x128xbf16> to vector<16x128xf32>
    %c0_5 = arith.constant 0 : index
    %c0_6 = arith.constant 0 : index
    %8 = vector.load %arg4[%c0_5, %c0_6] : memref<4x128xf32, #tpu.memory_space<vmem>>, vector<4x128xf32>
    %9 = tpu.concatenate %8, %8, %8, %8 in 0 : vector<4x128xf32>, vector<4x128xf32>, vector<4x128xf32>, vector<4x128xf32> -> vector<16x128xf32>
    %10 = arith.addf %7, %9 : vector<16x128xf32>
    %c0_7 = arith.constant 0 : index
    %c0_8 = arith.constant 0 : index
    %11 = vector.load %arg5[%c0_7, %c0_8] : memref<16x128xf32, #tpu.memory_space<vmem>>, vector<16x128xf32>
    tpu.vector_store %arg5[%c0_7, %c0_8], %10 {strides = array<i32>} : memref<16x128xf32, #tpu.memory_space<vmem>>, vector<16x128xf32>,
    return
  }
  func.func @transform_0(%arg0: i32) -> (i32, i32) {
    %c0_i32 = arith.constant 0 : i32
    %c0_i32_0 = arith.constant 0 : i32
    return %arg0, %c0_i32 : i32, i32
  }
  func.func @transform_1(%arg0: i32) -> (i32, i32) {
    %c0_i32 = arith.constant 0 : i32
    %c0_i32_0 = arith.constant 0 : i32
    %c0_i32_1 = arith.constant 0 : i32
    return %c0_i32, %c0_i32_0 : i32, i32
  }
  func.func @transform_2(%arg0: i32) -> (i32, i32) {
    %c0_i32 = arith.constant 0 : i32
    %c0_i32_0 = arith.constant 0 : i32
    %c0_i32_1 = arith.constant 0 : i32
    return %c0_i32, %c0_i32_0 : i32, i32
  }
  func.func @transform_3(%arg0: i32) -> (i32, i32) {
    %c0_i32 = arith.constant 0 : i32
    %c0_i32_0 = arith.constant 0 : i32
    %c0_i32_1 = arith.constant 0 : i32
    return %c0_i32, %c0_i32_0 : i32, i32
  }
  func.func @transform_4(%arg0: i32) -> (i32, i32) {
    %c0_i32 = arith.constant 0 : i32
    %c0_i32_0 = arith.constant 0 : i32
    return %arg0, %c0_i32 : i32, i32
  }
}

</mosaic_0001>

<bundles_post_ra>
// kernel: temporal_patch_embedding.1
= control target key start
LH: loop header
LB: loop body
LE: loop exit
PB: predicated region body
PF: predicated region fallthrough
CT: control target
= control target key end

     0   :  { %9 = vsyncpa [#allocation3], 0  ;;  %s730_s0 = inlined_call_operand.vmem [shape: bf16[32,8], index: 0, kind: input, shape index: {}]   ;;  %s731_s1 = inlined_call_operand.hbm [shape: bf16[8,128], index: 1, kind: input, shape index: {}]   ;;  %s732_s2 = inlined_call_operand.vmem [shape: f32[1,128], index: 2, kind: input, shape index: {}]   ;;  %s733_s3 = inlined_call_operand.vmem [shape: f32[4,128], index: 3, kind: input, shape index: {}]   ;;  %s734_s4 = inlined_call_operand.hbm [shape: f32[32,128], index: 4, kind: output, shape index: {}]  }
   0x1   :  { %10 = vsyncpa [#allocation4], 0 }
   0x2   :  { %12 = vsyncpa [#allocation4 + $0x1], 0  ;;  %s585_s15 = smov 0   ;;  %s587_s16 = smov 0  }
   0x3   :  { %s589_s17 = smov 0   ;;  %s591_s18 = smov 0  }
   0x4 LB: > { %s606_s19 = sadd.s32 4294967295, %s552_s18   ;;  %s377_s20 = sadd.s32 4294967294, %s552_s18   ;;  %s552_s18 = sphi %s591_s18, %s750_s18   ;;  %s548_s17 = sphi %s589_s17, %s749_s17   ;;  %s544_s16 = sphi %s587_s16, %s748_s16   ;;  %s540_s15 = sphi %s585_s15, %s747_s15  }
   0x5   : > { %s610_s21 = sadd.s32 1, %s552_s18   ;;  %s114_s22 = sadd.s32 1, %s548_s17 }
   0x6   : > { %s111_s23 = ssub.s32 %s552_s18, %s610_s21  ;;  %p124_p0 = scmp.ne.s32.totalorder %s548_s17, %s544_s16 }
   0x7   : > { %p112_p1 = scmp.eq.s32.totalorder %s111_s23, 0  ;;  %p125_p2 = scmp.eq.s32.totalorder %s606_s19, 1 }
   0x8   : > { %p130_p3 = scmp.ne.s32.totalorder %s544_s16, %s540_s15  ;;  %p131_p4 = scmp.eq.s32.totalorder %s377_s20, 1 }
   0x9   : > { %s621_s24 = scalar_select %p112_p1, %s548_s17, %s114_s22  }
   0xa   : > { %p623_p5 = por %p125_p2, %p124_p0  ;;  %p627_p6 = por %p131_p4, %p130_p3 }
   0xb   : > { %p378_p7 = scmp.ge.s32.totalorder %s552_s18, 1  ;;  %p138_p8 = scmp.lt.s32.totalorder %s552_s18, 3 }
   0xc   : > { %s738_s25 = scalar_select %p623_p5, 1, 0 }
   0xd   : > { %s739_s26 = scalar_select %p627_p6, 1, 0 }
   0xe   : > { %p735_p9 = scmp.eq.s32.totalorder %s606_s19, 0  ;;  %p634_p10 = pnand %p378_p7, %p138_p8 }
   0xf   : > { %s554_s28 = smov [#allocation2]   ;;  %s458_s7 = scalar_lea.hbm %s731_s1, 64 }
  0x10   : > { %s740_s27 = scalar_select %p634_p10, 1, 0 }
  0x11   : > { %s151_s29 = sshll.u32 %s554_s28, 4  ;;  %p409_p11 = pneg %p634_p10  ;;  %s152_s29 = int_to_ptr.vmem [resolvable:$true] %s151_s29 }
  0x12   : > { %p459_p13 = scmp.ne.s32.totalorder %s731_s1, %s458_s7  ;;  %p465_p3 = scmp.lt.u32.totalorder %s458_s7, %s731_s1 }
  0x13   : > { %p642_p12 = pnand %p735_p9, %p409_p11 }
  0x15   : > { %p460_p0 = pneg %p642_p12 }
  0x17   : > { %p461_p1 = pnand %p460_p0, %p459_p13 }
  0x19   : > { %p462_p2 = pneg %p461_p1 }
  0x1b   : > { %p467_p4 = pnand %p465_p3, %p462_p2 }
  0x1d   : > { %470 = shalt.err (!%p467_p4)
}
  0x1e   : > { %s471_s12 = scalar_lea.vmem %s152_s29, 64  ;;  %p479_p9 = scmp.lt.s32.totalorder %s152_s29, %s152_s29 }
  0x1f   : > { %p472_p7 = scmp.ne.s32.totalorder %s152_s29, %s471_s12  ;;  %p480_p6 = scmp.lt.s32.totalorder %s471_s12, %s471_s12 }
  0x21   : > { %p474_p8 = pnand %p472_p7, %p460_p0  ;;  %p481_p5 = por %p480_p6, %p479_p9 }
  0x23   : > { %p475_p11 = pneg %p474_p8 }
  0x25   : > { %p482_p10 = pnand %p481_p5, %p475_p11 }
  0x27   : > { %485 = shalt.err (!%p482_p10)
}
  0x28   : > { %412 = dma.hbm_to_vmem [thread:$0]  (!%p642_p12), %s731_s1, 64, %s152_s29, [#allocation3]  }
  0x29   : > { %p742_p13 = scmp.ne.s32.totalorder %s740_s27, 0 }
  0x2a   : > { %p743_p1 = scmp.eq.s32.totalorder (!%p742_p13), %s606_s19, 0 }
  0x2b   : > { %179 = sbr.rel (%p742_p13) target bundleno = 295 (0x127), region = 36 }
  0x32   : > { %531 = dma.done.wait (%p743_p1), [#allocation3], 64   ;;  %p744_p0 = pmov %p743_p1 }
  0x33   : > { %s384_s20 = sshll.u32 %s606_s19, 1  ;;  %v555_v0 = vmov 0.0   ;;  %vm556_vm0 = vmmov 0   ;;  %vm232_vm1 = vcmask 1043456   ;;  %v215_v1 = vld [vmem:[#allocation2] sm:$0xf] }
  0x34   : > { %533 = vsyncadd (%p744_p0), [#allocation3], 4294967232  ;;  %397 = vmatprep.subr.bf16.mxu0 %v555_v0  ;;  %399 = vmatprep.mubr.msk.bf16.mxu0 %vm556_vm0, %v555_v0  ;;  %p206_p5 = scmp.lt.s32.totalorder %s384_s20, 3  ;;  %v234_v2 = vsel %vm232_vm1, %v215_v1, 0  ;;  %vm228_vm2 = vcmask 64512   ;;  %s202_s29 = sand.u32 1, %s544_s16  }
  0x35   : > { %398 = vmatpush3.bf16.msra.mxu0 %v234_v2  ;;  %v280_v4 = vld [vmem:[%s733_s3] sm:$0xf]  ;;  %s383_s6 = sshll.u32 %s202_s29, 4  ;;  %s394_s11 = sshll.u32 %s606_s19, 8 }
  0x36   : > { %s752_s20 = smov (!%p206_p5, %s384_s20), 3  ;;  %v386_v5 = vld [vmem:[%s732_s2] ss:$0 sm:$0xff]  ;;  %v282_v8 = vrot.slane %v280_v4, 4  ;;  %s204_s9 = scalar_lea.vmem [#allocation5], %s383_s6 }
  0x37   : > { %s385_s22 = sshll.u32 %s752_s20, 2  ;;  %s303_s10 = sshll.u32 %s204_s9, 4  ;;  %s687_s10 = int_to_ptr.vmem [resolvable:$true] %s303_s10 }
  0x38   : > { %s209_s28 = scalar_lea.vmem %s730_s0, %s385_s22  ;;  %v284_v14 = vsel %vm232_vm1, %v280_v4, %v282_v8  ;;  %s685_s14 = scalar_lea.hbm %s734_s4, %s394_s11 }
  0x39   : > { %v457_v3 = vld [vmem:[%s209_s28] sm:$0xff]   ;;  %s689_s20 = scalar_lea.sflag [#allocation4], %s202_s29  ;;  %s486_s19 = scalar_lea.vmem %s687_s10, 256 }
  0x3a   : > { %400 = vmatmul.mubr.msk.bf16.vlgmr.msra.gmra.mrb[0].mxu0 %vm228_vm2, %v457_v3  ;;  %p487_p6 = scmp.ne.s32.totalorder %s687_s10, %s486_s19  ;;  %p745_p9 = scmp.ne.s32.totalorder %s738_s25, 0 }
  0x3b   : > { %s557_s22 = smov [#allocation5]  }
  0x3c   : > { %p488_p10 = pnand %p487_p6, %p745_p9  ;;  %s490_s23 = sshll.u32 %s557_s22, 4  ;;  %s491_s23 = int_to_ptr.vmem [resolvable:$false] %s490_s23 }
  0x3d   : > { %s492_s27 = scalar_lea.vmem %s491_s23, 512  ;;  %p493_p2 = scmp.lt.s32.totalorder %s687_s10, %s491_s23 }
  0x3e   : > { %p489_p12 = pneg %p488_p10  ;;  %p494_p3 = scmp.lt.s32.totalorder %s492_s27, %s486_s19 }
  0x40   : > { %p495_p4 = por %p494_p3, %p493_p2 }
  0x42   : > { %p496_p7 = pnand %p495_p4, %p489_p12 }
 0x10d   : > { %v270_v6 = vpop.f32.mrb[0].mxu0 }
 0x10e   : > { %v401_v7 = vpop.f32.mrb[1].mxu0  ;;  %v271_v10 = vadd.f32 %v386_v5, %v270_v6 }
 0x10f   : > { %v273_v9 = vpop.f32.mrb[2].mxu0 }
 0x110   : > { %v274_v11 = vadd.f32 %v386_v5, %v273_v9  ;;  %v402_v12 = vpop.f32.mrb[3].mxu0 }
 0x112   : > { %v277_v13 = vpack.c.bf16 %v274_v11, %v271_v10 }
 0x114   : > { %v278_v15 = vunpack.c.l.bf16 %v277_v13  ;;  %v279_v16 = vunpack.c.h.bf16 %v277_v13 }
 0x116   : > { %v285_v17 = vadd.f32 %v284_v14, %v278_v15  ;;  %v286_v18 = vadd.f32 %v284_v14, %v279_v16 }
 0x118   : > { %287 = vst [vmem:[%s204_s9] sm:$0xff] %v285_v17  ;;  %288 = vst [vmem:[%s204_s9 + $0x8] sm:$0xff] %v286_v18 }
 0x119   : > { %499 = shalt.err (!%p496_p7)
}
 0x11a   : > { %s500_s28 = scalar_lea.hbm %s685_s14, 256  ;;  %s504_s5 = scalar_lea.hbm %s734_s4, 512 }
 0x11b   : > { %p501_p8 = scmp.ne.s32.totalorder %s685_s14, %s500_s28  ;;  %p505_p1 = scmp.lt.u32.totalorder %s685_s14, %s734_s4 }
 0x11c   : > { %p506_p0 = scmp.lt.u32.totalorder %s504_s5, %s500_s28  ;;  %p508_p6 = scmp.lt.u32.totalorder %s500_s28, %s685_s14 }
 0x11d   : > { %p502_p11 = pnand %p501_p8, %p745_p9 }
 0x11e   : > { %p507_p5 = por %p506_p0, %p505_p1 }
 0x11f   : > { %p503_p13 = pneg %p502_p11 }
 0x120   : > { %p509_p10 = por %p508_p6, %p507_p5 }
 0x122   : > { %p510_p12 = pnand %p509_p10, %p503_p13 }
 0x124   : > { %513 = shalt.err (!%p510_p12)
}
 0x125   : > { %s558_s8 = smov 128   ;;  %s559_s9 = smov 8  }
 0x126   : > { %407 = dma.vmem_to_hbm [thread:$0]  (%p745_p9), %s687_s10, 256, %s685_s14, %s689_s20, %s558_s8, %s558_s8, %s559_s9  }
 0x127 PF: > { %p419_p2 = scmp.ge.s32.totalorder %s552_s18, 2  ;;  %s318_s11 = sand.u32 1, %s540_s15  }
 0x128   : > { %p746_p3 = scmp.ne.s32.totalorder %s739_s26, 0  ;;  %s319_s12 = scalar_lea.sflag [#allocation4], %s318_s11 }
 0x12a   : > { %p414_p4 = pnand %p419_p2, %p746_p3 }
 0x12c   : > { %535 = dma.done.wait (!%p414_p4), %s319_s12, 256  }
 0x12d   : > { %537 = vsyncadd (!%p414_p4), %s319_s12, 4294967040  ;;  %p15_p7 = scmp.ge.s32.totalorder %s610_s21, 4   ;;  %s747_s15 = smov %s544_s16 }
 0x12e   : > { %s748_s16 = smov %s548_s17  ;;  %s749_s17 = smov %s621_s24 }
 0x12f   : > { %s750_s18 = smov %s610_s21  ;;  %17 = sbr.rel (!%p15_p7) target bundleno = 4 (0x4), region = 76 }
 0x136   :  { %324 = vsyncpa [#allocation3], 1 }
 0x137   :  { %326 = vsyncpa [#allocation3 + $0x1], 1 }
 0x138   :  { %327 = vsyncpa [#allocation4], 1 }
 0x139   :  { %329 = vsyncpa [#allocation4 + $0x1], 1 }

</bundles_post_ra>
